<compile_context>
chip_gen: v5e
topology: v5e:2x2
jax: 0.10.0
libtpu: 0.0.40
codegen_flags: <defaults>
</compile_context>

<pallas_src>
import numpy as np
import jax
import jax.numpy as jnp
from jax.experimental import pallas as pl
from jax.experimental.pallas import tpu as pltpu


# ----------------------------------------------------------------------------
# Centered, orthonormal DFT matrices (fftshift . FFT . ifftshift baked in) so
# the forward/backward operators become plain MXU matmuls inside the kernel.
#   y = M @ x  ==  fftshift(fft(ifftshift(x), norm="ortho"))
# ----------------------------------------------------------------------------
def _centered_dft_mats(n):
    eye = np.eye(n)
    pre = np.fft.ifftshift(eye, axes=0)
    fwd = np.fft.fftshift(np.fft.fft(pre, axis=0, norm="ortho"), axes=0)
    bwd = np.fft.fftshift(np.fft.ifft(pre, axis=0, norm="ortho"), axes=0)
    return fwd, bwd


def _ri(m):
    """Stack real/imag planes of a small complex matrix -> (2, n, n) f32."""
    return jnp.asarray(np.stack([np.real(m), np.imag(m)], axis=0), jnp.float32)


# ----------------------------------------------------------------------------
# Fused Pallas kernel: one (batch b, coil c) grid step.
# ----------------------------------------------------------------------------
def _mri_loglik_kernel(scale_ref, x_ref, s_ref, y_ref, m_ref,
                       fh_ref, fwt_ref, bh_ref, bwt_ref, o_ref):
    c = pl.program_id(1)
    scale = scale_ref[0]                       # scalar from SMEM

    x_r, x_i = x_ref[0], x_ref[1]              # (H, W) image planes
    s_r, s_i = s_ref[0], s_ref[1]              # (H, W) sensitivity planes
    y_r, y_i = y_ref[0], y_ref[1]              # (H, W) masked k-space planes
    m = m_ref[...]                             # (H, W) 0/1 sampling mask

    def cmatmul(a_r, a_i, b_r, b_i):
        rr = jnp.dot(a_r, b_r, preferred_element_type=jnp.float32)
        ii = jnp.dot(a_i, b_i, preferred_element_type=jnp.float32)
        ri = jnp.dot(a_r, b_i, preferred_element_type=jnp.float32)
        ir = jnp.dot(a_i, b_r, preferred_element_type=jnp.float32)
        return rr - ii, ri + ir

    # mul = scaling * (S * x)        (complex multiplication)
    mul_r = scale * (s_r * x_r - s_i * x_i)
    mul_i = scale * (s_r * x_i + s_i * x_r)

    # forward operator: centered ortho FFT2  ==  F_H @ X @ F_W^T
    t_r, t_i = cmatmul(fh_ref[0], fh_ref[1], mul_r, mul_i)
    k_r, k_i = cmatmul(t_r, t_i, fwt_ref[0], fwt_ref[1])

    # error = mask * F(mul) - scaling * mask * y
    e_r = m * (k_r - scale * y_r)
    e_i = m * (k_i - scale * y_i)

    # backward operator: centered ortho IFFT2  ==  B_H @ E @ B_W^T
    u_r, u_i = cmatmul(bh_ref[0], bh_ref[1], e_r, e_i)
    z_r, z_i = cmatmul(u_r, u_i, bwt_ref[0], bwt_ref[1])

    # conj(S) * z, accumulated over the coil grid axis directly in o_ref
    o_r = s_r * z_r + s_i * z_i
    o_i = s_r * z_i - s_i * z_r

    @pl.when(c == 0)
    def _():
        o_ref[0, :, :] = o_r
        o_ref[1, :, :] = o_i

    @pl.when(c != 0)
    def _():
        o_ref[0, :, :] = o_ref[0, :, :] + o_r
        o_ref[1, :, :] = o_ref[1, :, :] + o_i


# ----------------------------------------------------------------------------
# Public wrapper (takes complex-last tensors like the PyTorch module, returns
# (batch, complex, height, width) like out.align_to('batch','complex',...)).
# ----------------------------------------------------------------------------
@jax.jit
def mri_log_likelihood(input_image, masked_kspace, sensitivity_map,
                       sampling_mask, loglikelihood_scaling):
    """
    input_image:           (N, H, W, 2)
    masked_kspace:         (N, C, H, W, 2)
    sensitivity_map:       (N, C, H, W, 2)
    sampling_mask:         (Nm, 1, H, W, 1)  bool/0-1, Nm in {1, N}
    loglikelihood_scaling: scalar
    returns:               (N, 2, H, W)  float32
    """
    N, C, H, W, _ = masked_kspace.shape

    # complex-last -> complex-as-planes, W on the lane dimension
    x_p = jnp.transpose(input_image.astype(jnp.float32), (0, 3, 1, 2))          # (N, 2, H, W)
    s_p = jnp.transpose(sensitivity_map.astype(jnp.float32), (0, 1, 4, 2, 3))   # (N, C, 2, H, W)
    y_p = jnp.transpose(masked_kspace.astype(jnp.float32), (0, 1, 4, 2, 3))     # (N, C, 2, H, W)

    m = jnp.asarray(sampling_mask, jnp.float32).reshape(sampling_mask.shape[0], H, W)
    m_p = jnp.broadcast_to(m, (N, H, W))                                         # (N, H, W)

    scale = jnp.asarray(loglikelihood_scaling, jnp.float32).reshape(1)            # (1,) in SMEM

    fwd_h_c, bwd_h_c = _centered_dft_mats(H)
    fwd_w_c, bwd_w_c = _centered_dft_mats(W)
    fwd_h = _ri(fwd_h_c)        # (2, H, H) acts from the left
    bwd_h = _ri(bwd_h_c)
    fwd_wt = _ri(fwd_w_c.T)     # (2, W, W) acts from the right
    bwd_wt = _ri(bwd_w_c.T)

    out = pl.pallas_call(
        _mri_loglik_kernel,
        out_shape=jax.ShapeDtypeStruct((N, 2, H, W), jnp.float32),
        grid_spec=pltpu.PrefetchScalarGridSpec(
            num_scalar_prefetch=0,
            grid=(N, C),                                   # coil = reduction axis, last
            in_specs=[
                pl.BlockSpec(memory_space=pltpu.MemorySpace.SMEM),                   # scaling
                pl.BlockSpec((None, 2, H, W), lambda b, c: (b, 0, 0, 0)),            # image
                pl.BlockSpec((None, None, 2, H, W), lambda b, c: (b, c, 0, 0, 0)),   # sens map
                pl.BlockSpec((None, None, 2, H, W), lambda b, c: (b, c, 0, 0, 0)),   # kspace
                pl.BlockSpec((None, H, W), lambda b, c: (b, 0, 0)),                  # mask
                pl.BlockSpec((2, H, H), lambda b, c: (0, 0, 0)),                     # F_H
                pl.BlockSpec((2, W, W), lambda b, c: (0, 0, 0)),                     # F_W^T
                pl.BlockSpec((2, H, H), lambda b, c: (0, 0, 0)),                     # B_H
                pl.BlockSpec((2, W, W), lambda b, c: (0, 0, 0)),                     # B_W^T
            ],
            out_specs=pl.BlockSpec((None, 2, H, W), lambda b, c: (b, 0, 0, 0)),
        ),
        compiler_params=pltpu.CompilerParams(
            dimension_semantics=("parallel", "arbitrary")),
    )(scale, x_p, s_p, y_p, m_p, fwd_h, fwd_wt, bwd_h, bwd_wt)
    return out


# ----------------------------------------------------------------------------
# Pure-JAX reference (jnp.fft) with the same operator convention.
# ----------------------------------------------------------------------------
def mri_log_likelihood_reference(input_image, masked_kspace, sensitivity_map,
                                 sampling_mask, loglikelihood_scaling):
    xc = input_image[..., 0] + 1j * input_image[..., 1]              # (N, H, W)
    sc = sensitivity_map[..., 0] + 1j * sensitivity_map[..., 1]      # (N, C, H, W)
    yc = masked_kspace[..., 0] + 1j * masked_kspace[..., 1]          # (N, C, H, W)
    m = jnp.asarray(sampling_mask, jnp.float32)[..., 0]              # (Nm, 1, H, W)
    scale = jnp.asarray(loglikelihood_scaling, jnp.float32)

    def cfft2(a):
        return jnp.fft.fftshift(
            jnp.fft.fft2(jnp.fft.ifftshift(a, axes=(-2, -1)),
                         axes=(-2, -1), norm="ortho"), axes=(-2, -1))

    def cifft2(a):
        return jnp.fft.fftshift(
            jnp.fft.ifft2(jnp.fft.ifftshift(a, axes=(-2, -1)),
                          axes=(-2, -1), norm="ortho"), axes=(-2, -1))

    mul = scale * sc * xc[:, None, :, :]
    k = cfft2(mul)
    err = m * k - scale * (m * yc)
    z = cifft2(err)
    out = jnp.sum(jnp.conj(sc) * z, axis=1)                          # (N, H, W)
    return jnp.stack([jnp.real(out), jnp.imag(out)], axis=1)         # (N, 2, H, W)


if __name__ == "__main__":
    N, C, H, W = 2, 4, 16, 16

    key = jax.random.PRNGKey(0)
    kx, ks, ky, km = jax.random.split(key, 4)

    input_image = jax.random.normal(kx, (N, H, W, 2), jnp.float32)
    sensitivity_map = 0.5 * jax.random.normal(ks, (N, C, H, W, 2), jnp.float32)
    sampling_mask = jax.random.uniform(km, (1, 1, H, W, 1)) > 0.45        # bool
    masked_kspace = jax.random.normal(ky, (N, C, H, W, 2), jnp.float32)
    masked_kspace = masked_kspace * sampling_mask.astype(jnp.float32)
    loglikelihood_scaling = jnp.asarray(0.5, jnp.float32)

    out = mri_log_likelihood(input_image, masked_kspace, sensitivity_map,
                             sampling_mask, loglikelihood_scaling)
    out = jax.block_until_ready(out)
    assert out.shape == (N, 2, H, W), out.shape

    ref = mri_log_likelihood_reference(input_image, masked_kspace, sensitivity_map,
                                       sampling_mask, loglikelihood_scaling)
    ref = jax.block_until_ready(ref)

    max_err = float(jnp.max(jnp.abs(out - ref)))
    assert jnp.allclose(out, ref, rtol=2e-2, atol=2e-2), max_err

    print("KERNEL_OK")
</pallas_src>

<mosaic_0001>
module attributes {stable_mosaic.version = 11 : i64} {
  func.func @_mri_loglik_kernel(%arg0: i32, %arg1: i32, %arg2: memref<1xf32, #tpu.memory_space<smem>>, %arg3: memref<1x2x16x16xf32, #tpu.memory_space<vmem>>, %arg4: memref<1x1x2x16x16xf32, #tpu.memory_space<vmem>>, %arg5: memref<1x1x2x16x16xf32, #tpu.memory_space<vmem>>, %arg6: memref<1x16x16xf32, #tpu.memory_space<vmem>>, %arg7: memref<2x16x16xf32, #tpu.memory_space<vmem>>, %arg8: memref<2x16x16xf32, #tpu.memory_space<vmem>>, %arg9: memref<2x16x16xf32, #tpu.memory_space<vmem>>, %arg10: memref<2x16x16xf32, #tpu.memory_space<vmem>>, %arg11: memref<1x2x16x16xf32, #tpu.memory_space<vmem>>) attributes {dimension_semantics = [#tpu.dimension_semantics<parallel>, #tpu.dimension_semantics<arbitrary>], iteration_bounds = array<i64: 2, 4>, scalar_prefetch = 0 : i64, scratch_operands = 0 : i64, tpu.core_type = #tpu.core_type<tc>, window_params = [{transform_indices = @transform_0, window_bounds = array<i64: 1>}, {transform_indices = @transform_1, window_bounds = array<i64: 1, 2, 16, 16>}, {transform_indices = @transform_2, window_bounds = array<i64: 1, 1, 2, 16, 16>}, {transform_indices = @transform_3, window_bounds = array<i64: 1, 1, 2, 16, 16>}, {transform_indices = @transform_4, window_bounds = array<i64: 1, 16, 16>}, {pipeline_mode = #tpu.pipeline_mode<synchronous>, transform_indices = @transform_5, window_bounds = array<i64: 2, 16, 16>}, {pipeline_mode = #tpu.pipeline_mode<synchronous>, transform_indices = @transform_6, window_bounds = array<i64: 2, 16, 16>}, {pipeline_mode = #tpu.pipeline_mode<synchronous>, transform_indices = @transform_7, window_bounds = array<i64: 2, 16, 16>}, {pipeline_mode = #tpu.pipeline_mode<synchronous>, transform_indices = @transform_8, window_bounds = array<i64: 2, 16, 16>}, {transform_indices = @transform_9, window_bounds = array<i64: 1, 2, 16, 16>}]} {
    %c0 = arith.constant 0 : index
    %0 = memref.load %arg2[%c0] : memref<1xf32, #tpu.memory_space<smem>>
    %c0_0 = arith.constant 0 : index
    %c0_1 = arith.constant 0 : index
    %c0_2 = arith.constant 0 : index
    %c0_3 = arith.constant 0 : index
    %1 = vector.load %arg3[%c0_0, %c0_1, %c0_2, %c0_3] : memref<1x2x16x16xf32, #tpu.memory_space<vmem>>, vector<1x1x16x16xf32>
    %2 = vector.shape_cast %1 : vector<1x1x16x16xf32> to vector<16x16xf32>
    %c0_4 = arith.constant 0 : index
    %c1 = arith.constant 1 : index
    %c0_5 = arith.constant 0 : index
    %c0_6 = arith.constant 0 : index
    %3 = vector.load %arg3[%c0_4, %c1, %c0_5, %c0_6] : memref<1x2x16x16xf32, #tpu.memory_space<vmem>>, vector<1x1x16x16xf32>
    %4 = vector.shape_cast %3 : vector<1x1x16x16xf32> to vector<16x16xf32>
    %c0_7 = arith.constant 0 : index
    %c0_8 = arith.constant 0 : index
    %c0_9 = arith.constant 0 : index
    %c0_10 = arith.constant 0 : index
    %c0_11 = arith.constant 0 : index
    %5 = vector.load %arg4[%c0_7, %c0_8, %c0_9, %c0_10, %c0_11] : memref<1x1x2x16x16xf32, #tpu.memory_space<vmem>>, vector<1x1x1x16x16xf32>
    %6 = vector.shape_cast %5 : vector<1x1x1x16x16xf32> to vector<16x16xf32>
    %c0_12 = arith.constant 0 : index
    %c0_13 = arith.constant 0 : index
    %c1_14 = arith.constant 1 : index
    %c0_15 = arith.constant 0 : index
    %c0_16 = arith.constant 0 : index
    %7 = vector.load %arg4[%c0_12, %c0_13, %c1_14, %c0_15, %c0_16] : memref<1x1x2x16x16xf32, #tpu.memory_space<vmem>>, vector<1x1x1x16x16xf32>
    %8 = vector.shape_cast %7 : vector<1x1x1x16x16xf32> to vector<16x16xf32>
    %c0_17 = arith.constant 0 : index
    %c0_18 = arith.constant 0 : index
    %c0_19 = arith.constant 0 : index
    %c0_20 = arith.constant 0 : index
    %c0_21 = arith.constant 0 : index
    %9 = vector.load %arg5[%c0_17, %c0_18, %c0_19, %c0_20, %c0_21] : memref<1x1x2x16x16xf32, #tpu.memory_space<vmem>>, vector<1x1x1x16x16xf32>
    %10 = vector.shape_cast %9 : vector<1x1x1x16x16xf32> to vector<16x16xf32>
    %c0_22 = arith.constant 0 : index
    %c0_23 = arith.constant 0 : index
    %c1_24 = arith.constant 1 : index
    %c0_25 = arith.constant 0 : index
    %c0_26 = arith.constant 0 : index
    %11 = vector.load %arg5[%c0_22, %c0_23, %c1_24, %c0_25, %c0_26] : memref<1x1x2x16x16xf32, #tpu.memory_space<vmem>>, vector<1x1x1x16x16xf32>
    %12 = vector.shape_cast %11 : vector<1x1x1x16x16xf32> to vector<16x16xf32>
    %c0_27 = arith.constant 0 : index
    %c0_28 = arith.constant 0 : index
    %c0_29 = arith.constant 0 : index
    %13 = vector.load %arg6[%c0_27, %c0_28, %c0_29] : memref<1x16x16xf32, #tpu.memory_space<vmem>>, vector<1x16x16xf32>
    %14 = vector.shape_cast %13 : vector<1x16x16xf32> to vector<16x16xf32>
    %15 = arith.mulf %6, %2 : vector<16x16xf32>
    %16 = arith.mulf %8, %4 : vector<16x16xf32>
    %17 = arith.subf %15, %16 : vector<16x16xf32>
    %18 = vector.broadcast %0 : f32 to vector<16x16xf32>
    %19 = arith.mulf %18, %17 : vector<16x16xf32>
    %20 = arith.mulf %6, %4 : vector<16x16xf32>
    %21 = arith.mulf %8, %2 : vector<16x16xf32>
    %22 = arith.addf %20, %21 : vector<16x16xf32>
    %23 = vector.broadcast %0 : f32 to vector<16x16xf32>
    %24 = arith.mulf %23, %22 : vector<16x16xf32>
    %c0_30 = arith.constant 0 : index
    %c0_31 = arith.constant 0 : index
    %c0_32 = arith.constant 0 : index
    %25 = vector.load %arg7[%c0_30, %c0_31, %c0_32] : memref<2x16x16xf32, #tpu.memory_space<vmem>>, vector<1x16x16xf32>
    %26 = vector.shape_cast %25 : vector<1x16x16xf32> to vector<16x16xf32>
    %c1_33 = arith.constant 1 : index
    %c0_34 = arith.constant 0 : index
    %c0_35 = arith.constant 0 : index
    %27 = vector.load %arg7[%c1_33, %c0_34, %c0_35] : memref<2x16x16xf32, #tpu.memory_space<vmem>>, vector<1x16x16xf32>
    %28 = vector.shape_cast %27 : vector<1x16x16xf32> to vector<16x16xf32>
    %cst = arith.constant dense<0.000000e+00> : vector<16x16xf32>
    %29 = tpu.matmul %26, %19, %cst {dimension_numbers = #tpu.dot_dimension_numbers<[1], [0], [0], [1], [0, 0, 1, 1], [], []>} : vector<16x16xf32>, vector<16x16xf32>, vector<16x16xf32> -> vector<16x16xf32>
    %cst_36 = arith.constant dense<0.000000e+00> : vector<16x16xf32>
    %30 = tpu.matmul %28, %24, %cst_36 {dimension_numbers = #tpu.dot_dimension_numbers<[1], [0], [0], [1], [0, 0, 1, 1], [], []>} : vector<16x16xf32>, vector<16x16xf32>, vector<16x16xf32> -> vector<16x16xf32>
    %cst_37 = arith.constant dense<0.000000e+00> : vector<16x16xf32>
    %31 = tpu.matmul %26, %24, %cst_37 {dimension_numbers = #tpu.dot_dimension_numbers<[1], [0], [0], [1], [0, 0, 1, 1], [], []>} : vector<16x16xf32>, vector<16x16xf32>, vector<16x16xf32> -> vector<16x16xf32>
    %cst_38 = arith.constant dense<0.000000e+00> : vector<16x16xf32>
    %32 = tpu.matmul %28, %19, %cst_38 {dimension_numbers = #tpu.dot_dimension_numbers<[1], [0], [0], [1], [0, 0, 1, 1], [], []>} : vector<16x16xf32>, vector<16x16xf32>, vector<16x16xf32> -> vector<16x16xf32>
    %33 = arith.subf %29, %30 : vector<16x16xf32>
    %34 = arith.addf %31, %32 : vector<16x16xf32>
    %c0_39 = arith.constant 0 : index
    %c0_40 = arith.constant 0 : index
    %c0_41 = arith.constant 0 : index
    %35 = vector.load %arg8[%c0_39, %c0_40, %c0_41] : memref<2x16x16xf32, #tpu.memory_space<vmem>>, vector<1x16x16xf32>
    %36 = vector.shape_cast %35 : vector<1x16x16xf32> to vector<16x16xf32>
    %c1_42 = arith.constant 1 : index
    %c0_43 = arith.constant 0 : index
    %c0_44 = arith.constant 0 : index
    %37 = vector.load %arg8[%c1_42, %c0_43, %c0_44] : memref<2x16x16xf32, #tpu.memory_space<vmem>>, vector<1x16x16xf32>
    %38 = vector.shape_cast %37 : vector<1x16x16xf32> to vector<16x16xf32>
    %cst_45 = arith.constant dense<0.000000e+00> : vector<16x16xf32>
    %39 = tpu.matmul %33, %36, %cst_45 {dimension_numbers = #tpu.dot_dimension_numbers<[1], [0], [0], [1], [0, 0, 1, 1], [], []>} : vector<16x16xf32>, vector<16x16xf32>, vector<16x16xf32> -> vector<16x16xf32>
    %cst_46 = arith.constant dense<0.000000e+00> : vector<16x16xf32>
    %40 = tpu.matmul %34, %38, %cst_46 {dimension_numbers = #tpu.dot_dimension_numbers<[1], [0], [0], [1], [0, 0, 1, 1], [], []>} : vector<16x16xf32>, vector<16x16xf32>, vector<16x16xf32> -> vector<16x16xf32>
    %cst_47 = arith.constant dense<0.000000e+00> : vector<16x16xf32>
    %41 = tpu.matmul %33, %38, %cst_47 {dimension_numbers = #tpu.dot_dimension_numbers<[1], [0], [0], [1], [0, 0, 1, 1], [], []>} : vector<16x16xf32>, vector<16x16xf32>, vector<16x16xf32> -> vector<16x16xf32>
    %cst_48 = arith.constant dense<0.000000e+00> : vector<16x16xf32>
    %42 = tpu.matmul %34, %36, %cst_48 {dimension_numbers = #tpu.dot_dimension_numbers<[1], [0], [0], [1], [0, 0, 1, 1], [], []>} : vector<16x16xf32>, vector<16x16xf32>, vector<16x16xf32> -> vector<16x16xf32>
    %43 = arith.subf %39, %40 : vector<16x16xf32>
    %44 = arith.addf %41, %42 : vector<16x16xf32>
    %45 = vector.broadcast %0 : f32 to vector<16x16xf32>
    %46 = arith.mulf %45, %10 : vector<16x16xf32>
    %47 = arith.subf %43, %46 : vector<16x16xf32>
    %48 = arith.mulf %14, %47 : vector<16x16xf32>
    %49 = vector.broadcast %0 : f32 to vector<16x16xf32>
    %50 = arith.mulf %49, %12 : vector<16x16xf32>
    %51 = arith.subf %44, %50 : vector<16x16xf32>
    %52 = arith.mulf %14, %51 : vector<16x16xf32>
    %c0_49 = arith.constant 0 : index
    %c0_50 = arith.constant 0 : index
    %c0_51 = arith.constant 0 : index
    %53 = vector.load %arg9[%c0_49, %c0_50, %c0_51] : memref<2x16x16xf32, #tpu.memory_space<vmem>>, vector<1x16x16xf32>
    %54 = vector.shape_cast %53 : vector<1x16x16xf32> to vector<16x16xf32>
    %c1_52 = arith.constant 1 : index
    %c0_53 = arith.constant 0 : index
    %c0_54 = arith.constant 0 : index
    %55 = vector.load %arg9[%c1_52, %c0_53, %c0_54] : memref<2x16x16xf32, #tpu.memory_space<vmem>>, vector<1x16x16xf32>
    %56 = vector.shape_cast %55 : vector<1x16x16xf32> to vector<16x16xf32>
    %cst_55 = arith.constant dense<0.000000e+00> : vector<16x16xf32>
    %57 = tpu.matmul %54, %48, %cst_55 {dimension_numbers = #tpu.dot_dimension_numbers<[1], [0], [0], [1], [0, 0, 1, 1], [], []>} : vector<16x16xf32>, vector<16x16xf32>, vector<16x16xf32> -> vector<16x16xf32>
    %cst_56 = arith.constant dense<0.000000e+00> : vector<16x16xf32>
    %58 = tpu.matmul %56, %52, %cst_56 {dimension_numbers = #tpu.dot_dimension_numbers<[1], [0], [0], [1], [0, 0, 1, 1], [], []>} : vector<16x16xf32>, vector<16x16xf32>, vector<16x16xf32> -> vector<16x16xf32>
    %cst_57 = arith.constant dense<0.000000e+00> : vector<16x16xf32>
    %59 = tpu.matmul %54, %52, %cst_57 {dimension_numbers = #tpu.dot_dimension_numbers<[1], [0], [0], [1], [0, 0, 1, 1], [], []>} : vector<16x16xf32>, vector<16x16xf32>, vector<16x16xf32> -> vector<16x16xf32>
    %cst_58 = arith.constant dense<0.000000e+00> : vector<16x16xf32>
    %60 = tpu.matmul %56, %48, %cst_58 {dimension_numbers = #tpu.dot_dimension_numbers<[1], [0], [0], [1], [0, 0, 1, 1], [], []>} : vector<16x16xf32>, vector<16x16xf32>, vector<16x16xf32> -> vector<16x16xf32>
    %61 = arith.subf %57, %58 : vector<16x16xf32>
    %62 = arith.addf %59, %60 : vector<16x16xf32>
    %c0_59 = arith.constant 0 : index
    %c0_60 = arith.constant 0 : index
    %c0_61 = arith.constant 0 : index
    %63 = vector.load %arg10[%c0_59, %c0_60, %c0_61] : memref<2x16x16xf32, #tpu.memory_space<vmem>>, vector<1x16x16xf32>
    %64 = vector.shape_cast %63 : vector<1x16x16xf32> to vector<16x16xf32>
    %c1_62 = arith.constant 1 : index
    %c0_63 = arith.constant 0 : index
    %c0_64 = arith.constant 0 : index
    %65 = vector.load %arg10[%c1_62, %c0_63, %c0_64] : memref<2x16x16xf32, #tpu.memory_space<vmem>>, vector<1x16x16xf32>
    %66 = vector.shape_cast %65 : vector<1x16x16xf32> to vector<16x16xf32>
    %cst_65 = arith.constant dense<0.000000e+00> : vector<16x16xf32>
    %67 = tpu.matmul %61, %64, %cst_65 {dimension_numbers = #tpu.dot_dimension_numbers<[1], [0], [0], [1], [0, 0, 1, 1], [], []>} : vector<16x16xf32>, vector<16x16xf32>, vector<16x16xf32> -> vector<16x16xf32>
    %cst_66 = arith.constant dense<0.000000e+00> : vector<16x16xf32>
    %68 = tpu.matmul %62, %66, %cst_66 {dimension_numbers = #tpu.dot_dimension_numbers<[1], [0], [0], [1], [0, 0, 1, 1], [], []>} : vector<16x16xf32>, vector<16x16xf32>, vector<16x16xf32> -> vector<16x16xf32>
    %cst_67 = arith.constant dense<0.000000e+00> : vector<16x16xf32>
    %69 = tpu.matmul %61, %66, %cst_67 {dimension_numbers = #tpu.dot_dimension_numbers<[1], [0], [0], [1], [0, 0, 1, 1], [], []>} : vector<16x16xf32>, vector<16x16xf32>, vector<16x16xf32> -> vector<16x16xf32>
    %cst_68 = arith.constant dense<0.000000e+00> : vector<16x16xf32>
    %70 = tpu.matmul %62, %64, %cst_68 {dimension_numbers = #tpu.dot_dimension_numbers<[1], [0], [0], [1], [0, 0, 1, 1], [], []>} : vector<16x16xf32>, vector<16x16xf32>, vector<16x16xf32> -> vector<16x16xf32>
    %71 = arith.subf %67, %68 : vector<16x16xf32>
    %72 = arith.addf %69, %70 : vector<16x16xf32>
    %73 = arith.mulf %6, %71 : vector<16x16xf32>
    %74 = arith.mulf %8, %72 : vector<16x16xf32>
    %75 = arith.addf %73, %74 : vector<16x16xf32>
    %76 = arith.mulf %6, %72 : vector<16x16xf32>
    %77 = arith.mulf %8, %71 : vector<16x16xf32>
    %78 = arith.subf %76, %77 : vector<16x16xf32>
    %c0_i32 = arith.constant 0 : i32
    %79 = arith.cmpi eq, %arg1, %c0_i32 : i32
    %80 = arith.extui %79 : i1 to i32
    %c0_i32_69 = arith.constant 0 : i32
    %81 = arith.cmpi ne, %80, %c0_i32_69 : i32
    scf.if %81 {
      %c0_72 = arith.constant 0 : index
      %c0_73 = arith.constant 0 : index
      %c0_74 = arith.constant 0 : index
      %c0_75 = arith.constant 0 : index
      %85 = vector.load %arg11[%c0_72, %c0_73, %c0_74, %c0_75] : memref<1x2x16x16xf32, #tpu.memory_space<vmem>>, vector<1x1x16x16xf32>
      %86 = vector.shape_cast %85 : vector<1x1x16x16xf32> to vector<16x16xf32>
      %87 = vector.shape_cast %75 : vector<16x16xf32> to vector<1x1x16x16xf32>
      tpu.vector_store %arg11[%c0_72, %c0_73, %c0_74, %c0_75], %87 {strides = array<i32>} : memref<1x2x16x16xf32, #tpu.memory_space<vmem>>, vector<1x1x16x16xf32>,
      %c0_76 = arith.constant 0 : index
      %c1_77 = arith.constant 1 : index
      %c0_78 = arith.constant 0 : index
      %c0_79 = arith.constant 0 : index
      %88 = vector.load %arg11[%c0_76, %c1_77, %c0_78, %c0_79] : memref<1x2x16x16xf32, #tpu.memory_space<vmem>>, vector<1x1x16x16xf32>
      %89 = vector.shape_cast %88 : vector<1x1x16x16xf32> to vector<16x16xf32>
      %90 = vector.shape_cast %78 : vector<16x16xf32> to vector<1x1x16x16xf32>
      tpu.vector_store %arg11[%c0_76, %c1_77, %c0_78, %c0_79], %90 {strides = array<i32>} : memref<1x2x16x16xf32, #tpu.memory_space<vmem>>, vector<1x1x16x16xf32>,
    } else {
    }
    %c0_i32_70 = arith.constant 0 : i32
    %82 = arith.cmpi ne, %arg1, %c0_i32_70 : i32
    %83 = arith.extui %82 : i1 to i32
    %c0_i32_71 = arith.constant 0 : i32
    %84 = arith.cmpi ne, %83, %c0_i32_71 : i32
    scf.if %84 {
      %c0_72 = arith.constant 0 : index
      %c0_73 = arith.constant 0 : index
      %c0_74 = arith.constant 0 : index
      %c0_75 = arith.constant 0 : index
      %85 = vector.load %arg11[%c0_72, %c0_73, %c0_74, %c0_75] : memref<1x2x16x16xf32, #tpu.memory_space<vmem>>, vector<1x1x16x16xf32>
      %86 = vector.shape_cast %85 : vector<1x1x16x16xf32> to vector<16x16xf32>
      %87 = arith.addf %86, %75 : vector<16x16xf32>
      %c0_76 = arith.constant 0 : index
      %c0_77 = arith.constant 0 : index
      %c0_78 = arith.constant 0 : index
      %c0_79 = arith.constant 0 : index
      %88 = vector.load %arg11[%c0_76, %c0_77, %c0_78, %c0_79] : memref<1x2x16x16xf32, #tpu.memory_space<vmem>>, vector<1x1x16x16xf32>
      %89 = vector.shape_cast %88 : vector<1x1x16x16xf32> to vector<16x16xf32>
      %90 = vector.shape_cast %87 : vector<16x16xf32> to vector<1x1x16x16xf32>
      tpu.vector_store %arg11[%c0_76, %c0_77, %c0_78, %c0_79], %90 {strides = array<i32>} : memref<1x2x16x16xf32, #tpu.memory_space<vmem>>, vector<1x1x16x16xf32>,
      %c0_80 = arith.constant 0 : index
      %c1_81 = arith.constant 1 : index
      %c0_82 = arith.constant 0 : index
      %c0_83 = arith.constant 0 : index
      %91 = vector.load %arg11[%c0_80, %c1_81, %c0_82, %c0_83] : memref<1x2x16x16xf32, #tpu.memory_space<vmem>>, vector<1x1x16x16xf32>
      %92 = vector.shape_cast %91 : vector<1x1x16x16xf32> to vector<16x16xf32>
      %93 = arith.addf %92, %78 : vector<16x16xf32>
      %c0_84 = arith.constant 0 : index
      %c1_85 = arith.constant 1 : index
      %c0_86 = arith.constant 0 : index
      %c0_87 = arith.constant 0 : index
      %94 = vector.load %arg11[%c0_84, %c1_85, %c0_86, %c0_87] : memref<1x2x16x16xf32, #tpu.memory_space<vmem>>, vector<1x1x16x16xf32>
      %95 = vector.shape_cast %94 : vector<1x1x16x16xf32> to vector<16x16xf32>
      %96 = vector.shape_cast %93 : vector<16x16xf32> to vector<1x1x16x16xf32>
      tpu.vector_store %arg11[%c0_84, %c1_85, %c0_86, %c0_87], %96 {strides = array<i32>} : memref<1x2x16x16xf32, #tpu.memory_space<vmem>>, vector<1x1x16x16xf32>,
    } else {
    }
    return
  }
  func.func @transform_0(%arg0: i32, %arg1: i32) -> i32 {
    %c0_i32 = arith.constant 0 : i32
    %c0_i32_0 = arith.constant 0 : i32
    return %c0_i32 : i32
  }
  func.func @transform_1(%arg0: i32, %arg1: i32) -> (i32, i32, i32, i32) {
    %c0_i32 = arith.constant 0 : i32
    %c0_i32_0 = arith.constant 0 : i32
    %c0_i32_1 = arith.constant 0 : i32
    %c0_i32_2 = arith.constant 0 : i32
    return %arg0, %c0_i32, %c0_i32_0, %c0_i32_1 : i32, i32, i32, i32
  }
  func.func @transform_2(%arg0: i32, %arg1: i32) -> (i32, i32, i32, i32, i32) {
    %c0_i32 = arith.constant 0 : i32
    %c0_i32_0 = arith.constant 0 : i32
    %c0_i32_1 = arith.constant 0 : i32
    %c0_i32_2 = arith.constant 0 : i32
    return %arg0, %arg1, %c0_i32, %c0_i32_0, %c0_i32_1 : i32, i32, i32, i32, i32
  }
  func.func @transform_3(%arg0: i32, %arg1: i32) -> (i32, i32, i32, i32, i32) {
    %c0_i32 = arith.constant 0 : i32
    %c0_i32_0 = arith.constant 0 : i32
    %c0_i32_1 = arith.constant 0 : i32
    %c0_i32_2 = arith.constant 0 : i32
    return %arg0, %arg1, %c0_i32, %c0_i32_0, %c0_i32_1 : i32, i32, i32, i32, i32
  }
  func.func @transform_4(%arg0: i32, %arg1: i32) -> (i32, i32, i32) {
    %c0_i32 = arith.constant 0 : i32
    %c0_i32_0 = arith.constant 0 : i32
    %c0_i32_1 = arith.constant 0 : i32
    return %arg0, %c0_i32, %c0_i32_0 : i32, i32, i32
  }
  func.func @transform_5(%arg0: i32, %arg1: i32) -> (i32, i32, i32) {
    %c0_i32 = arith.constant 0 : i32
    %c0_i32_0 = arith.constant 0 : i32
    %c0_i32_1 = arith.constant 0 : i32
    %c0_i32_2 = arith.constant 0 : i32
    return %c0_i32, %c0_i32_0, %c0_i32_1 : i32, i32, i32
  }
  func.func @transform_6(%arg0: i32, %arg1: i32) -> (i32, i32, i32) {
    %c0_i32 = arith.constant 0 : i32
    %c0_i32_0 = arith.constant 0 : i32
    %c0_i32_1 = arith.constant 0 : i32
    %c0_i32_2 = arith.constant 0 : i32
    return %c0_i32, %c0_i32_0, %c0_i32_1 : i32, i32, i32
  }
  func.func @transform_7(%arg0: i32, %arg1: i32) -> (i32, i32, i32) {
    %c0_i32 = arith.constant 0 : i32
    %c0_i32_0 = arith.constant 0 : i32
    %c0_i32_1 = arith.constant 0 : i32
    %c0_i32_2 = arith.constant 0 : i32
    return %c0_i32, %c0_i32_0, %c0_i32_1 : i32, i32, i32
  }
  func.func @transform_8(%arg0: i32, %arg1: i32) -> (i32, i32, i32) {
    %c0_i32 = arith.constant 0 : i32
    %c0_i32_0 = arith.constant 0 : i32
    %c0_i32_1 = arith.constant 0 : i32
    %c0_i32_2 = arith.constant 0 : i32
    return %c0_i32, %c0_i32_0, %c0_i32_1 : i32, i32, i32
  }
  func.func @transform_9(%arg0: i32, %arg1: i32) -> (i32, i32, i32, i32) {
    %c0_i32 = arith.constant 0 : i32
    %c0_i32_0 = arith.constant 0 : i32
    %c0_i32_1 = arith.constant 0 : i32
    %c0_i32_2 = arith.constant 0 : i32
    return %arg0, %c0_i32, %c0_i32_0, %c0_i32_1 : i32, i32, i32, i32
  }
}

</mosaic_0001>

<bundles_post_ra>
// kernel: mri_log_likelihood.1
= control target key start
LH: loop header
LB: loop body
LE: loop exit
PB: predicated region body
PF: predicated region fallthrough
CT: control target
= control target key end

     0   :  { %s1681_s0 = inlined_call_operand.<no memory space> [shape: f32[1], index: 0, kind: input, shape index: {}]   ;;  %s1682_s1 = inlined_call_operand.vmem [shape: f32[2,2,16,16], index: 1, kind: input, shape index: {}]   ;;  %s1683_s2 = inlined_call_operand.vmem [shape: f32[2,4,2,16,16], index: 2, kind: input, shape index: {}]   ;;  %s1684_s3 = inlined_call_operand.vmem [shape: f32[2,4,2,16,16], index: 3, kind: input, shape index: {}]   ;;  %s1685_s4 = inlined_call_operand.vmem [shape: f32[2,16,16], index: 4, kind: input, shape index: {}]   ;;  %s1686_s5 = inlined_call_operand.vmem [shape: f32[2,16,16], index: 5, kind: input, shape index: {}, may-alias: {5,6}]   ;;  %s1687_s6 = inlined_call_operand.vmem [shape: f32[2,16,16], index: 6, kind: input, shape index: {}, may-alias: {5,6}]   ;;  %s1688_s7 = inlined_call_operand.vmem [shape: f32[2,16,16], index: 7, kind: input, shape index: {}, may-alias: {7,8}]   ;;  %s1689_s8 = inlined_call_operand.vmem [shape: f32[2,16,16], index: 8, kind: input, shape index: {}, may-alias: {7,8}]   ;;  %s1690_s9 = inlined_call_operand.hbm [shape: f32[2,2,16,16], index: 9, kind: output, shape index: {}]  }
   0x1   :  { %14 = sst [smem:[#allocation2]] %s1681_s0 }
   0x2   :  { %15 = vsyncpa [#allocation4], 0 }
   0x3   :  { %17 = vsyncpa [#allocation4 + $0x1], 0  ;;  %s1407_s11 = smov 0   ;;  %s1409_s12 = smov 0  }
   0x4   :  { %s1411_s13 = smov 0   ;;  %s1413_s14 = smov 0  }
   0x5   :  { %s1415_s15 = smov 0   ;;  %s1417_s16 = smov 0  }
   0x6   :  { %s1419_s17 = smov 0   ;;  %s1421_s18 = smov 0  }
   0x7 LB: > { %1696 = sst [smem:[#allocation6_spill]] %s1330_s13  ;;  %s1105_s0 = sadd.s32 4294967295, %s1350_s18   ;;  %s1350_s18 = sphi %s1421_s18, %s23_s18   ;;  %s1346_s17 = sphi %s1419_s17, %s1714_s17   ;;  %s1342_s16 = sphi %s1417_s16, %s1710_s16   ;;  %s1338_s15 = sphi %s1415_s15, %s1709_s15   ;;  %s1334_s14 = sphi %s1413_s14, %s1708_s14   ;;  %s1330_s13 = sphi %s1411_s13, %s1707_s13   ;;  %s1326_s12 = sphi %s1409_s12, %s1713_s12   ;;  %s1322_s11 = sphi %s1407_s11, %s1712_s11  }
   0x8   : > { %1697 = sst [smem:[#allocation7_spill]] %s1342_s16  ;;  %s1106_s19 = sadd.s32 4294967294, %s1350_s18  }
   0x9   : > { %1698 = sst [smem:[#allocation8_spill]] %s1346_s17  ;;  %s32_s20 = sadd.s32 1, %s1342_s16 }
   0xa   : > { %p33_p0 = scmp.ge.s32.totalorder %s32_s20, 4  ;;  %s35_s21 = sadd.s32 1, %s1346_s17 }
   0xb   : > { %p265_p1 = scmp.ne.s32.totalorder %s1330_s13, %s1326_s12  ;;  %p266_p2 = scmp.eq.s32.totalorder %s1105_s0, 7 }
   0xc   : > { %s1716_s20 = smov (%p33_p0, %s32_s20), 0  ;;  %s1718_s21 = smov (!%p33_p0, %s35_s21), %s1346_s17 }
   0xd   : > { %1699 = sst [smem:[#allocation9_spill]] %s1716_s20  ;;  %p1456_p3 = por %p266_p2, %p265_p1 }
   0xe   : > { %p271_p4 = scmp.ne.s32.totalorder %s1326_s12, %s1322_s11  ;;  %p37_p5 = scmp.ge.s32.totalorder %s1718_s21, 2 }
   0xf   : > { %p272_p6 = scmp.eq.s32.totalorder %s1106_s19, 7  ;;  %p1109_p7 = scmp.ge.s32.totalorder %s1350_s18, 1 }
  0x10   : > { %p345_p8 = scmp.lt.s32.totalorder %s1350_s18, 9  ;;  %s1720_s21 = smov (%p37_p5, %s1718_s21), 0 }
  0x11   : > { %1701 = sst [smem:[#allocation10_spill]] %s1720_s21  ;;  %p1466_p9 = por %p272_p6, %p271_p4 }
  0x12   : > { %p346_p10 = pnand %p1109_p7, %p345_p8  ;;  %s252_s24 = ssub.s32 %s1346_s17, %s1720_s21 }
  0x13   : > { %s1702_s23 = scalar_select %p1466_p9, 1, 0 }
  0x14   : > { %s255_s25 = sadd.s32 1, %s1330_s13  ;;  %p253_p11 = scmp.eq.s32.totalorder %s252_s24, 0 }
  0x15   : > { %1703 = sst [smem:[#allocation11_spill]] %s1702_s23  ;;  %349 = sbr.rel (%p346_p10) target bundleno = 639 (0x27f), region = 56 }
  0x16   : > { %s1474_s26 = scalar_select %p253_p11, %s1330_s13, %s255_s25  }
  0x17   : > { %p404_p12 = scmp.lt.s32.totalorder (!%p346_p10), %s1338_s15, 1  ;;  %p411_p13 = scmp.lt.s32.totalorder (!%p346_p10), %s1334_s14, 3 }
  0x18   : > { %1704 = sst [smem:[#allocation12_spill]] %s1474_s26  ;;  %s401_s28 = sand.u32 (!%p346_p10), 1, %s1326_s12  }
  0x19   : > { %s432_s27 = sld [smem:[#allocation2]] (!%p346_p10)  ;;  %s1494_s17 = sshll.u32 (!%p346_p10), %s401_s28, 5 }
  0x1a   : > { %s1480_s29 = scalar_select %p404_p12, %s1338_s15, 1  ;;  %v1127_v25 = vld [vmem:[%s1686_s5 + $0x10] sm:$0xff]  ;;  %vm472_vm0 = vcmask 130048   ;;  %v467_v26 = vld [vmem:[%s1686_s5] sm:$0xff]  ;;  %v1128_v27 = vld [vmem:[%s1686_s5 + $0x18] sm:$0xff] }
  0x1b   : > { %s412_s30 = scalar_select %p411_p13, %s1334_s14, 3  ;;  %v468_v28 = vld [vmem:[%s1686_s5 + $0x8] sm:$0xff]  ;;  %v1138_v30 = vld [vmem:[%s1687_s6 + $0x18] sm:$0xff]  ;;  %v579_v31 = vld [vmem:[%s1687_s6] sm:$0xff] }
  0x1c   : > { %s1180_s10 = sshll.u32 %s1480_s29, 5  ;;  %s1114_s0 = sshll.u32 %s1480_s29, 4  ;;  %v580_v29 = vld [vmem:[%s1687_s6 + $0x8] sm:$0xff]  ;;  %v1137_v32 = vld [vmem:[%s1687_s6 + $0x10] sm:$0xff] }
  0x1d   : > { %s408_s25 = scalar_lea.vmem %s1682_s1, %s1180_s10  ;;  %s1113_s21 = sshll.u32 %s412_s30, 2 }
  0x1e   : > { %s1490_s20 = sadd.s32 %s1114_s0, %s1113_s21  ;;  %v434_v0 = vld [vmem:[%s408_s25 + $0x8] sm:$0xff]  ;;  %v1122_v1 = vld [vmem:[%s408_s25 + $0x18] sm:$0xff]  ;;  %v433_v2 = vld [vmem:[%s408_s25] sm:$0xff]  ;;  %p1167_p0 = scmp.ne.s32.totalorder %s1334_s14, 0 }
  0x1f   : > { %s1115_s16 = sshll.u32 %s1490_s20, 3  ;;  %v1121_v3 = vld [vmem:[%s408_s25 + $0x10] sm:$0xff]  ;;  %v1506_v6 = vstv %s432_s27  ;;  %s431_s20 = scalar_lea.vmem %s1685_s4, %s1114_s0 }
  0x20   : > { %s417_s23 = scalar_lea.vmem %s1683_s2, %s1115_s16  ;;  %s426_s24 = scalar_lea.vmem %s1684_s3, %s1115_s16  ;;  %v449_v58 = vld [vmem:[%s431_s20 + $0x8] sm:$0xff]  ;;  %v448_v63 = vld [vmem:[%s431_s20] sm:$0xff] }
  0x21   : > { %v1502_v4 = vld [vmem:[%s417_s23 + $0x8] sm:$0xff]  ;;  %v1504_v5 = vld [vmem:[%s417_s23 + $0x18] sm:$0xff]  ;;  %v1508_v7 = vld [vmem:[%s417_s23] sm:$0xff]  ;;  %s403_s0 = scalar_lea.vmem [#allocation3], %s1494_s17 }
  0x22   : > { %v451_v8 = vmul.f32 %v1502_v4, %v434_v0  ;;  %v453_v9 = vmul.f32 %v1504_v5, %v1122_v1  ;;  %v460_v10 = vmul.f32 %v1122_v1, %v1502_v4  ;;  %v462_v11 = vmul.f32 %v1504_v5, %v434_v0  ;;  %v1514_v12 = vld [vmem:[%s417_s23 + $0x10] sm:$0xff]  ;;  %v443_v48 = vld [vmem:[%s426_s24] sm:$0xff]  ;;  %v444_v49 = vld [vmem:[%s426_s24 + $0x8] sm:$0xff] }
  0x23   : > { %v450_v13 = vmul.f32 %v1508_v7, %v433_v2  ;;  %v452_v14 = vmul.f32 %v1514_v12, %v1121_v3  ;;  %v459_v15 = vmul.f32 %v1121_v3, %v1508_v7  ;;  %v461_v16 = vmul.f32 %v1514_v12, %v433_v2  ;;  %v1125_v57 = vld [vmem:[%s426_s24 + $0x10] sm:$0xff]  ;;  %v1126_v59 = vld [vmem:[%s426_s24 + $0x18] sm:$0xff] }
  0x24   : > { %v455_v17 = vsub.f32 %v451_v8, %v453_v9  ;;  %v464_v18 = vadd.f32 %v462_v11, %v460_v10  ;;  %v690_v53 = vmul.f32 %v1506_v6, %v443_v48  ;;  %v691_v54 = vmul.f32 %v1506_v6, %v444_v49  ;;  %v1147_v11 = vld [vmem:[%s1688_s7 + $0x10] sm:$0xff] }
  0x25   : > { %v454_v19 = vsub.f32 %v450_v13, %v452_v14  ;;  %v463_v20 = vadd.f32 %v461_v16, %v459_v15  ;;  %v696_v1 = vmul.f32 %v1125_v57, %v1506_v6  ;;  %v697_v3 = vmul.f32 %v1126_v59, %v1506_v6  ;;  %v814_v13 = vld [vmem:[%s1689_s8 + $0x8] sm:$0xff] }
  0x26   : > { %v458_v21 = vmul.f32 %v1506_v6, %v455_v17  ;;  %v466_v22 = vmul.f32 %v464_v18, %v1506_v6  ;;  %v1158_v18 = vld [vmem:[%s1689_s8 + $0x18] sm:$0xff] }
  0x27   : > { %v457_v23 = vmul.f32 %v1506_v6, %v454_v19  ;;  %v465_v24 = vmul.f32 %v463_v20, %v1506_v6  ;;  %v702_v6 = vld [vmem:[%s1688_s7] sm:$0xff]  ;;  %v1148_v19 = vld [vmem:[%s1688_s7 + $0x18] sm:$0xff]  ;;  %v703_v20 = vld [vmem:[%s1688_s7 + $0x8] sm:$0xff] }
  0x28   : > { %545 = vmatpush.msra.mxu2 %v458_v21  ;;  %570 = vmatpush.msra.mxu3 %v466_v22 }
  0x29   : > { %493 = vmatpush.msra.mxu0 %v458_v21  ;;  %522 = vmatpush.msra.mxu1 %v466_v22  ;;  %v813_v21 = vld [vmem:[%s1689_s8] sm:$0xff]  ;;  %v1157_v22 = vld [vmem:[%s1689_s8 + $0x10] sm:$0xff] }
  0x2a   : > { %546 = vmatpush.msra.mxu2 %v457_v23  ;;  %571 = vmatpush.msra.mxu3 %v465_v24 }
  0x2b   : > { %1133 = vmatmul.msk.f32.vlgmr.msra.gmra.mxu2 %vm472_vm0, %v1127_v25  ;;  %1135 = vmatmul.msk.f32.vlgmr.msra.gmra.mxu3 %vm472_vm0, %v467_v26 }
  0x2c   : > { %494 = vmatpush.msra.mxu0 %v457_v23  ;;  %523 = vmatpush.msra.mxu1 %v465_v24 }
  0x2d   : > { %1129 = vmatmul.msk.f32.vlgmr.msra.gmra.mxu0 %vm472_vm0, %v467_v26  ;;  %1131 = vmatmul.msk.f32.vlgmr.msra.gmra.mxu1 %vm472_vm0, %v1127_v25 }
  0x2e   : > { %604 = vmatpush.msrb.mxu0 %v580_v29  ;;  %633 = vmatpush.msrb.mxu1 %v1138_v30 }
  0x2f   : > { %656 = vmatpush.msrb.mxu2 %v580_v29  ;;  %681 = vmatpush.msrb.mxu3 %v1138_v30 }
  0x30   : > { %605 = vmatpush.msrb.mxu0 %v579_v31  ;;  %634 = vmatpush.msrb.mxu1 %v1137_v32 }
  0x31   : > { %657 = vmatpush.msrb.mxu2 %v579_v31  ;;  %682 = vmatpush.msrb.mxu3 %v1137_v32 }
  0x33   : > { %1134 = vmatmul.msk.f32.gmra.mxu2 %vm472_vm0, %v1128_v27  ;;  %1136 = vmatmul.msk.f32.gmra.mxu3 %vm472_vm0, %v468_v28 }
  0x35   : > { %1130 = vmatmul.msk.f32.gmra.mxu0 %vm472_vm0, %v468_v28  ;;  %1132 = vmatmul.msk.f32.gmra.mxu1 %vm472_vm0, %v1128_v27 }
  0xaa   : > { %v496_v33 = vpop.f32.mrf.mxu0  ;;  %v525_v34 = vpop.f32.mrf.mxu1 }
  0xab   : > { %v554_v35 = vsub.f32 %v496_v33, %v525_v34 }
  0xad   : > { %1139 = vmatmul.msk.f32.vlgmr.msrb.gmra.mxu0 %vm472_vm0, %v554_v35  ;;  %1145 = vmatmul.msk.f32.vlgmr.msrb.gmra.mxu3 %vm472_vm0, %v554_v35 }
  0xae   : > { %v548_v36 = vpop.f32.mrf.mxu2  ;;  %v573_v37 = vpop.f32.mrf.mxu3 }
  0xaf   : > { %v574_v38 = vadd.f32 %v573_v37, %v548_v36 }
  0xb1   : > { %1141 = vmatmul.msk.f32.vlgmr.msrb.gmra.mxu1 %vm472_vm0, %v574_v38  ;;  %1143 = vmatmul.msk.f32.vlgmr.msrb.gmra.mxu2 %vm472_vm0, %v574_v38 }
  0xb2   : > { %v499_v39 = vpop.f32.mrf.mxu0  ;;  %v528_v40 = vpop.f32.mrf.mxu1 }
  0xb3   : > { %v555_v41 = vsub.f32 %v499_v39, %v528_v40 }
  0xb5   : > { %1140 = vmatmul.msk.f32.gmra.mxu0 %vm472_vm0, %v555_v41  ;;  %1146 = vmatmul.msk.f32.gmra.mxu3 %vm472_vm0, %v555_v41 }
  0xb6   : > { %v551_v42 = vpop.f32.mrf.mxu2  ;;  %v576_v43 = vpop.f32.mrf.mxu3 }
  0xb7   : > { %v577_v44 = vadd.f32 %v576_v43, %v551_v42 }
  0xb9   : > { %1142 = vmatmul.msk.f32.gmra.mxu1 %vm472_vm0, %v577_v44  ;;  %1144 = vmatmul.msk.f32.gmra.mxu2 %vm472_vm0, %v577_v44 }
 0x12a   : > { %v607_v45 = vpop.f32.mrf.mxu0 }
 0x12e   : > { %v636_v46 = vpop.f32.mrf.mxu1 }
 0x12f   : > { %v665_v52 = vsub.f32 %v607_v45, %v636_v46 }
 0x130   : > { %v684_v47 = vpop.f32.mrf.mxu3 }
 0x131   : > { %v692_v60 = vsub.f32 %v665_v52, %v690_v53 }
 0x132   : > { %v610_v51 = vpop.f32.mrf.mxu0 }
 0x133   : > { %v694_v10 = vmul.f32 %v692_v60, %v448_v63 }
 0x134   : > { %v659_v50 = vpop.f32.mrf.mxu2 }
 0x135   : > { %v685_v0 = vadd.f32 %v684_v47, %v659_v50 }
 0x136   : > { %v639_v55 = vpop.f32.mrf.mxu1 }
 0x137   : > { %v666_v56 = vsub.f32 %v610_v51, %v639_v55  ;;  %v698_v14 = vsub.f32 %v685_v0, %v696_v1 }
 0x138   : > { %v687_v62 = vpop.f32.mrf.mxu3 }
 0x139   : > { %v693_v61 = vsub.f32 %v666_v56, %v691_v54  ;;  %v700_v17 = vmul.f32 %v698_v14, %v448_v63 }
 0x13b   : > { %v695_v2 = vmul.f32 %v693_v61, %v449_v58 }
 0x13c   : > { %v662_v8 = vpop.f32.mrf.mxu2 }
 0x13d   : > { %v688_v9 = vadd.f32 %v687_v62, %v662_v8  ;;  %727 = vmatpush.msra.mxu0 %v695_v2  ;;  %779 = vmatpush.msra.mxu2 %v695_v2 }
 0x13f   : > { %v699_v15 = vsub.f32 %v688_v9, %v697_v3  ;;  %728 = vmatpush.msra.mxu0 %v694_v10  ;;  %780 = vmatpush.msra.mxu2 %v694_v10 }
 0x140   : > { %1153 = vmatmul.msk.f32.vlgmr.msra.gmra.mxu2 %vm472_vm0, %v1147_v11  ;;  %1149 = vmatmul.msk.f32.vlgmr.msra.gmra.mxu0 %vm472_vm0, %v702_v6 }
 0x141   : > { %v701_v16 = vmul.f32 %v699_v15, %v449_v58  ;;  %890 = vmatpush.msrb.mxu2 %v814_v13  ;;  %838 = vmatpush.msrb.mxu0 %v814_v13 }
 0x143   : > { %756 = vmatpush.msra.mxu1 %v701_v16  ;;  %804 = vmatpush.msra.mxu3 %v701_v16 }
 0x144   : > { %891 = vmatpush.msrb.mxu2 %v813_v21  ;;  %839 = vmatpush.msrb.mxu0 %v813_v21 }
 0x145   : > { %757 = vmatpush.msra.mxu1 %v700_v17  ;;  %805 = vmatpush.msra.mxu3 %v700_v17 }
 0x146   : > { %1155 = vmatmul.msk.f32.vlgmr.msra.gmra.mxu3 %vm472_vm0, %v702_v6  ;;  %1151 = vmatmul.msk.f32.vlgmr.msra.gmra.mxu1 %vm472_vm0, %v1147_v11 }
 0x147   : > { %915 = vmatpush.msrb.mxu3 %v1158_v18  ;;  %867 = vmatpush.msrb.mxu1 %v1158_v18 }
 0x148   : > { %1154 = vmatmul.msk.f32.gmra.mxu2 %vm472_vm0, %v1148_v19  ;;  %1150 = vmatmul.msk.f32.gmra.mxu0 %vm472_vm0, %v703_v20 }
 0x149   : > { %916 = vmatpush.msrb.mxu3 %v1157_v22  ;;  %868 = vmatpush.msrb.mxu1 %v1157_v22 }
 0x14e   : > { %1156 = vmatmul.msk.f32.gmra.mxu3 %vm472_vm0, %v703_v20  ;;  %1152 = vmatmul.msk.f32.gmra.mxu1 %vm472_vm0, %v1148_v19 }
 0x1bd   : > { %v730_v23 = vpop.f32.mrf.mxu0 }
 0x1c3   : > { %v759_v24 = vpop.f32.mrf.mxu1  ;;  %v782_v26 = vpop.f32.mrf.mxu2 }
 0x1c4   : > { %v788_v25 = vsub.f32 %v730_v23, %v759_v24 }
 0x1c5   : > { %v733_v28 = vpop.f32.mrf.mxu0 }
 0x1c6   : > { %1165 = vmatmul.msk.f32.vlgmr.msrb.gmra.mxu3 %vm472_vm0, %v788_v25  ;;  %1159 = vmatmul.msk.f32.vlgmr.msrb.gmra.mxu0 %vm472_vm0, %v788_v25 }
 0x1c9   : > { %v807_v27 = vpop.f32.mrf.mxu3 }
 0x1ca   : > { %v808_v29 = vadd.f32 %v807_v27, %v782_v26 }
 0x1cb   : > { %v762_v30 = vpop.f32.mrf.mxu1  ;;  %v785_v32 = vpop.f32.mrf.mxu2 }
 0x1cc   : > { %1163 = vmatmul.msk.f32.vlgmr.msrb.gmra.mxu2 %vm472_vm0, %v808_v29  ;;  %v789_v31 = vsub.f32 %v733_v28, %v762_v30  ;;  %1161 = vmatmul.msk.f32.vlgmr.msrb.gmra.mxu1 %vm472_vm0, %v808_v29 }
 0x1ce   : > { %1166 = vmatmul.msk.f32.gmra.mxu3 %vm472_vm0, %v789_v31  ;;  %1160 = vmatmul.msk.f32.gmra.mxu0 %vm472_vm0, %v789_v31 }
 0x1d1   : > { %v810_v33 = vpop.f32.mrf.mxu3 }
 0x1d2   : > { %v811_v34 = vadd.f32 %v810_v33, %v785_v32 }
 0x1d4   : > { %1164 = vmatmul.msk.f32.gmra.mxu2 %vm472_vm0, %v811_v34  ;;  %1162 = vmatmul.msk.f32.gmra.mxu1 %vm472_vm0, %v811_v34 }
 0x243   : > { %v841_v35 = vpop.f32.mrf.mxu0 }
 0x249   : > { %v870_v36 = vpop.f32.mrf.mxu1  ;;  %v918_v37 = vpop.f32.mrf.mxu3 }
 0x24a   : > { %v899_v38 = vsub.f32 %v841_v35, %v870_v36 }
 0x24b   : > { %v844_v45 = vpop.f32.mrf.mxu0 }
 0x24c   : > { %v924_v41 = vmul.f32 %v899_v38, %v1508_v7  ;;  %v932_v42 = vmul.f32 %v1514_v12, %v899_v38 }
 0x24f   : > { %v893_v39 = vpop.f32.mrf.mxu2 }
 0x250   : > { %v919_v40 = vadd.f32 %v918_v37, %v893_v39 }
 0x251   : > { %v873_v46 = vpop.f32.mrf.mxu1  ;;  %v921_v49 = vpop.f32.mrf.mxu3 }
 0x252   : > { %v926_v43 = vmul.f32 %v1514_v12, %v919_v40  ;;  %v930_v44 = vmul.f32 %v919_v40, %v1508_v7  ;;  %v900_v50 = vsub.f32 %v844_v45, %v873_v46 }
 0x254   : > { %v928_v47 = vadd.f32 %v926_v43, %v924_v41  ;;  %v934_v48 = vsub.f32 %v930_v44, %v932_v42  ;;  %v925_v53 = vmul.f32 %v900_v50, %v1502_v4  ;;  %v933_v54 = vmul.f32 %v1504_v5, %v900_v50 }
 0x257   : > { %v896_v51 = vpop.f32.mrf.mxu2 }
 0x258   : > { %v922_v52 = vadd.f32 %v921_v49, %v896_v51  ;;  %939 = sbr.rel (%p1167_p0) target bundleno = 609 (0x261), region = 60 }
 0x25a   : > { %v927_v55 = vmul.f32 %v1504_v5, %v922_v52  ;;  %v931_v56 = vmul.f32 %v922_v52, %v1502_v4 }
 0x25c   : > { %v929_v12 = vadd.f32 %v927_v55, %v925_v53  ;;  %v935_v57 = vsub.f32 %v931_v56, %v933_v54 }
 0x25d   : > { %940 = vst.msk [vmem:[%s403_s0] sm:$0xff] %vm472_vm0, %v928_v47 }
 0x25e   : > { %941 = vst.msk [vmem:[%s403_s0 + $0x8] sm:$0xff] %vm472_vm0, %v929_v12 }
 0x25f   : > { %1168 = vst.msk [vmem:[%s403_s0 + $0x10] sm:$0xff] %vm472_vm0, %v934_v48 }
 0x260   : > { %1169 = vst.msk [vmem:[%s403_s0 + $0x18] sm:$0xff] %vm472_vm0, %v935_v57 }
 0x261 PF: > { %p1170_p1 = scmp.eq.s32.totalorder %s1334_s14, 0 }
 0x263   : > { %948 = sbr.rel (%p1170_p1) target bundleno = 623 (0x26f), region = 64 }
 0x268   : > { %v949_v5 = vld [vmem:[%s403_s0] sm:$0xff]  ;;  %v950_v4 = vld [vmem:[%s403_s0 + $0x8] sm:$0xff]  ;;  %v1171_v7 = vld [vmem:[%s403_s0 + $0x10] sm:$0xff] }
 0x269   : > { %v951_v58 = vadd.f32 %v949_v5, %v928_v47  ;;  %v952_v59 = vadd.f32 %v950_v4, %v929_v12  ;;  %v958_v60 = vadd.f32 %v1171_v7, %v934_v48  ;;  %v1172_v61 = vld [vmem:[%s403_s0 + $0x18] sm:$0xff] }
 0x26a   : > { %v959_v62 = vadd.f32 %v1172_v61, %v935_v57 }
 0x26b   : > { %953 = vst.msk [vmem:[%s403_s0] sm:$0xff] %vm472_vm0, %v951_v58 }
 0x26c   : > { %954 = vst.msk [vmem:[%s403_s0 + $0x8] sm:$0xff] %vm472_vm0, %v952_v59 }
 0x26d   : > { %1173 = vst.msk [vmem:[%s403_s0 + $0x10] sm:$0xff] %vm472_vm0, %v958_v60 }
 0x26e   : > { %1174 = vst.msk [vmem:[%s403_s0 + $0x18] sm:$0xff] %vm472_vm0, %v959_v62 }
 0x26f PF: > { %s1182_s14 = sshll.u32 %s1338_s15, 5  ;;  %s975_s26 = sshll.u32 %s403_s0, 4  ;;  %s976_s26 = int_to_ptr.vmem [resolvable:$true] %s975_s26 }
 0x270   : > { %s974_s23 = scalar_lea.hbm %s1690_s9, %s1182_s14  ;;  %s963_s30 = scalar_lea.sflag [#allocation4], %s401_s28 }
 0x271   : > { %s977_s27 = sshll.u32 %s974_s23, 4  ;;  %s1276_s15 = scalar_lea.hbm %s1690_s9, 64  ;;  %s978_s27 = int_to_ptr.hbm [resolvable:$true] %s977_s27 }
 0x272   : > { %s1270_s10 = sshra.s32 %s978_s27, 4  ;;  %s1271_s10 = int_to_ptr.hbm [resolvable:$true] %s1270_s10 }
 0x273   : > { %s1272_s19 = scalar_lea.hbm %s1271_s10, 32  ;;  %p1277_p6 = scmp.lt.s32.totalorder %s1271_s10, %s1690_s9 }
 0x274   : > { %p1273_p2 = scmp.ne.s32.totalorder %s1271_s10, %s1272_s19  ;;  %p1278_p7 = scmp.lt.s32.totalorder %s1276_s15, %s1272_s19 }
 0x276   : > { %p1274_p4 = pnand %p1273_p2, %p1456_p3  ;;  %p1279_p8 = por %p1278_p7, %p1277_p6 }
 0x278   : > { %p1275_p5 = pneg %p1274_p4 }
 0x27a   : > { %p1280_p10 = pnand %p1279_p8, %p1275_p5 }
 0x27c   : > { %1283 = shalt.err (!%p1280_p10)
}
 0x27d   : > { %s1352_s28 = smov 128   ;;  %s1353_s16 = smov 8  }
 0x27e   : > { %1183 = dma.vmem_to_hbm [thread:$0]  (%p1456_p3), %s976_s26, 512, %s978_s27, %s963_s30, %s1352_s28, %s1352_s28, %s1353_s16  }
 0x27f PF: > { %p1189_p11 = scmp.ge.s32.totalorder %s1350_s18, 2  ;;  %s992_s0 = sand.u32 1, %s1322_s11  }
 0x280   : > { %s993_s14 = scalar_lea.sflag [#allocation4], %s992_s0 }
 0x281   : > { %p1186_p12 = pnand %p1189_p11, %p1466_p9 }
 0x283   : > { %p1187_p13 = pneg %p1186_p12 }
 0x285   : > { %1317 = dma.done.wait (%p1187_p13), %s993_s14, 512  }
 0x286   : > { %1319 = vsyncadd (%p1187_p13), %s993_s14, 4294966784  ;;  %s23_s18 = sadd.s32 1, %s1350_s18   ;;  %s1706_s17 = sld [smem:[#allocation6_spill]] }
 0x287   : > { %p20_p0 = scmp.ge.s32.totalorder %s23_s18, 10   ;;  %s1707_s13 = sld [smem:[#allocation12_spill]] }
 0x288   : > { %s1708_s14 = sld [smem:[#allocation7_spill]]  ;;  %s1712_s11 = smov %s1326_s12 }
 0x289   : > { %s1709_s15 = sld [smem:[#allocation8_spill]] }
 0x28a   : > { %s1710_s16 = sld [smem:[#allocation9_spill]] }
 0x28b   : > { %s1711_s22 = sld [smem:[#allocation10_spill]] }
 0x28c   : > { %s1713_s12 = smov %s1706_s17 }
 0x28d   :  { %22 = sbr.rel (!%p20_p0) target bundleno = 7 (0x7), region = 117 }
 0x291   : > { %s1714_s17 = smov %s1711_s22 }
 0x292   :  { %999 = vsyncpa [#allocation4], 1 }
 0x293   :  { %1001 = vsyncpa [#allocation4 + $0x1], 1 }

</bundles_post_ra>
